<compile_context>
chip_gen: v7x
topology: tpu7x:2x2x1
jax: 0.10.0
libtpu: 0.0.40
codegen_flags: <defaults>
</compile_context>

<pallas_src>
import math

import jax
import jax.numpy as jnp
from jax.experimental import pallas as pl
from jax.experimental.pallas import tpu as pltpu


# ------------------------------------------------------------------
# Pallas kernel:  out_tile = ((4*pi/P) * Y) @ tanh(Y^T @ F_tile)
#   computed directly in [C, M] layout (M on lanes).
# ------------------------------------------------------------------
def _s2_act_kernel(f_ref, yt_ref, ys_ref, o_ref):
    # f_ref : [C, tm]  features tile (lanes = flattened batch M)
    # yt_ref: [P, C]   Y^T (resident every step)
    # ys_ref: [C, P]   (4*pi/P) * Y (resident, scale pre-folded)
    # o_ref : [C, tm]  output tile (lane-dense)
    s = jnp.dot(yt_ref[...], f_ref[...],
                preferred_element_type=jnp.float32)          # [P, tm] signal on sphere
    a = jnp.tanh(s)                                          # pointwise nonlinearity (f32)
    o = jnp.dot(ys_ref[...], a,
                preferred_element_type=jnp.float32)          # [C, tm] projected back
    o_ref[...] = o.astype(o_ref.dtype)


def s2_activation_pallas(features, Y, dim=-1, tm=512):
    """Pallas implementation of S2Activation.forward(features, dim)."""
    C, P = Y.shape
    assert features.shape[dim] == C
    assert tm % 128 == 0, "lane tile must be a multiple of 128"

    # torch .transpose(0, dim) == swap of the two axes
    f = jnp.swapaxes(features, 0, dim)            # [C, ...rest]
    f_shape = f.shape
    F = f.reshape(C, -1)                          # [C, M]  (M on lanes, no transpose)
    M = F.shape[1]

    # lane tile: a big multiple of 128, or the full (possibly small) M axis
    tm_eff = tm if M > tm else M
    grid = pl.cdiv(M, tm_eff)

    yt = Y.T.astype(jnp.float32)                          # [P, C]
    ys = (4.0 * math.pi / P) * Y.astype(jnp.float32)      # [C, P], scale folded in

    out = pl.pallas_call(
        _s2_act_kernel,
        out_shape=jax.ShapeDtypeStruct((C, M), features.dtype),
        grid_spec=pltpu.PrefetchScalarGridSpec(
            num_scalar_prefetch=0,
            grid=(grid,),
            in_specs=[
                pl.BlockSpec((C, tm_eff), lambda i: (0, i)),   # F tile
                pl.BlockSpec((P, C), lambda i: (0, 0)),        # Y^T (resident)
                pl.BlockSpec((C, P), lambda i: (0, 0)),        # scaled Y (resident)
            ],
            out_specs=pl.BlockSpec((C, tm_eff), lambda i: (0, i)),
        ),
        compiler_params=pltpu.CompilerParams(
            dimension_semantics=("parallel",),     # megacore sharding of M on v7x
        ),
    )(F, yt, ys)

    out = out.reshape(f_shape)                    # [C, ...rest]
    return jnp.swapaxes(out, 0, dim)


# ------------------------------------------------------------------
# Deterministic construction of the Y buffer (real spherical harmonics,
# l = 0, 1, 2 -> C = 1 + 3 + 5 = 9), mirroring __init__:
#   x = randn(n, 3); x = cat([x, -x]); Y = Y_lm(x)   -> shape [C, 2n]
# ------------------------------------------------------------------
def make_Y(n, key):
    x = jax.random.normal(key, (n, 3), dtype=jnp.float32)
    x = jnp.concatenate([x, -x], axis=0)                         # [2n, 3]
    x = x / jnp.linalg.norm(x, axis=1, keepdims=True)
    xs, ys, zs = x[:, 0], x[:, 1], x[:, 2]
    c0 = 0.28209479177387814
    c1 = 0.4886025119029199
    c2a = 1.0925484305920792
    c2b = 0.31539156525252005
    c2c = 0.5462742152960396
    sh = [
        c0 * jnp.ones_like(xs),          # l=0
        c1 * ys,                         # l=1, m=-1
        c1 * zs,                         # l=1, m= 0
        c1 * xs,                         # l=1, m=+1
        c2a * xs * ys,                   # l=2, m=-2
        c2a * ys * zs,                   # l=2, m=-1
        c2b * (3.0 * zs * zs - 1.0),     # l=2, m= 0
        c2a * xs * zs,                   # l=2, m=+1
        c2c * (xs * xs - ys * ys),       # l=2, m=+2
    ]
    return jnp.stack(sh, axis=0)                                 # [9, 2n]


def s2_activation_ref(features, Y, dim=-1):
    """Pure-JAX reference mirroring the torch forward exactly."""
    f = jnp.swapaxes(features, 0, dim)
    F = f.reshape(f.shape[0], -1)
    out = 4.0 * math.pi / Y.shape[1] * (Y @ jnp.tanh(Y.T @ F))
    out = out.reshape(f.shape)
    return jnp.swapaxes(out, 0, dim)


if __name__ == "__main__":
    key = jax.random.PRNGKey(0)
    k_y, k_f1, k_f2 = jax.random.split(key, 3)

    # Rs = [(1,0,p),(1,1,p),(1,2,p)] -> C = 9 channels; n = 64 points -> P = 128
    n = 64
    Y = make_Y(n, k_y)                                   # [9, 128]
    C = Y.shape[0]

    # --- test 1: small batch, channel axis last (single block, M = 16) ---
    features = jax.random.normal(k_f1, (2, 8, C), dtype=jnp.float32)
    out = s2_activation_pallas(features, Y, dim=-1)
    out = jax.block_until_ready(out)
    ref = s2_activation_ref(features, Y, dim=-1)
    assert out.shape == features.shape
    assert jnp.allclose(out, ref, atol=1e-5, rtol=1e-5), "mismatch vs reference (test 1)"

    # --- test 2: exercises the multi-block ragged-M path (M = 4*37 = 148, tm = 128) ---
    features2 = jax.random.normal(k_f2, (4, 37, C), dtype=jnp.float32)
    out2 = s2_activation_pallas(features2, Y, dim=-1, tm=128)
    out2 = jax.block_until_ready(out2)
    ref2 = s2_activation_ref(features2, Y, dim=-1)
    assert out2.shape == features2.shape
    assert jnp.allclose(out2, ref2, atol=1e-5, rtol=1e-5), "mismatch vs reference (test 2)"

    print("KERNEL_OK")
</pallas_src>

<mosaic_0001>
module attributes {stable_mosaic.version = 11 : i64} {
  func.func @_s2_act_kernel(%arg0: i32, %arg1: memref<9x16xf32, #tpu.memory_space<vmem>>, %arg2: memref<128x9xf32, #tpu.memory_space<vmem>>, %arg3: memref<9x128xf32, #tpu.memory_space<vmem>>, %arg4: memref<9x16xf32, #tpu.memory_space<vmem>>) attributes {dimension_semantics = [#tpu.dimension_semantics<parallel>], iteration_bounds = array<i64: 1>, scalar_prefetch = 0 : i64, scratch_operands = 0 : i64, tpu.core_type = #tpu.core_type<tc>, window_params = [{transform_indices = @transform_0, window_bounds = array<i64: 9, 16>}, {pipeline_mode = #tpu.pipeline_mode<synchronous>, transform_indices = @transform_1, window_bounds = array<i64: 128, 9>}, {pipeline_mode = #tpu.pipeline_mode<synchronous>, transform_indices = @transform_2, window_bounds = array<i64: 9, 128>}, {transform_indices = @transform_3, window_bounds = array<i64: 9, 16>}]} {
    %c0 = arith.constant 0 : index
    %c0_0 = arith.constant 0 : index
    %0 = vector.load %arg2[%c0, %c0_0] : memref<128x9xf32, #tpu.memory_space<vmem>>, vector<128x9xf32>
    %c0_1 = arith.constant 0 : index
    %c0_2 = arith.constant 0 : index
    %1 = vector.load %arg1[%c0_1, %c0_2] : memref<9x16xf32, #tpu.memory_space<vmem>>, vector<9x16xf32>
    %cst = arith.constant dense<0.000000e+00> : vector<128x16xf32>
    %2 = tpu.matmul %0, %1, %cst {dimension_numbers = #tpu.dot_dimension_numbers<[1], [0], [0], [1], [0, 0, 1, 1], [], []>} : vector<128x9xf32>, vector<9x16xf32>, vector<128x16xf32> -> vector<128x16xf32>
    %3 = math.tanh %2 : vector<128x16xf32>
    %c0_3 = arith.constant 0 : index
    %c0_4 = arith.constant 0 : index
    %4 = vector.load %arg3[%c0_3, %c0_4] : memref<9x128xf32, #tpu.memory_space<vmem>>, vector<9x128xf32>
    %cst_5 = arith.constant dense<0.000000e+00> : vector<9x16xf32>
    %5 = tpu.matmul %4, %3, %cst_5 {dimension_numbers = #tpu.dot_dimension_numbers<[1], [0], [0], [1], [0, 0, 1, 1], [], []>} : vector<9x128xf32>, vector<128x16xf32>, vector<9x16xf32> -> vector<9x16xf32>
    %c0_6 = arith.constant 0 : index
    %c0_7 = arith.constant 0 : index
    %6 = vector.load %arg4[%c0_6, %c0_7] : memref<9x16xf32, #tpu.memory_space<vmem>>, vector<9x16xf32>
    tpu.vector_store %arg4[%c0_6, %c0_7], %5 {strides = array<i32>} : memref<9x16xf32, #tpu.memory_space<vmem>>, vector<9x16xf32>,
    return
  }
  func.func @transform_0(%arg0: i32) -> (i32, i32) {
    %c0_i32 = arith.constant 0 : i32
    %c0_i32_0 = arith.constant 0 : i32
    return %c0_i32, %arg0 : i32, i32
  }
  func.func @transform_1(%arg0: i32) -> (i32, i32) {
    %c0_i32 = arith.constant 0 : i32
    %c0_i32_0 = arith.constant 0 : i32
    %c0_i32_1 = arith.constant 0 : i32
    return %c0_i32, %c0_i32_0 : i32, i32
  }
  func.func @transform_2(%arg0: i32) -> (i32, i32) {
    %c0_i32 = arith.constant 0 : i32
    %c0_i32_0 = arith.constant 0 : i32
    %c0_i32_1 = arith.constant 0 : i32
    return %c0_i32, %c0_i32_0 : i32, i32
  }
  func.func @transform_3(%arg0: i32) -> (i32, i32) {
    %c0_i32 = arith.constant 0 : i32
    %c0_i32_0 = arith.constant 0 : i32
    return %c0_i32, %arg0 : i32, i32
  }
}

</mosaic_0001>

<bundles_post_ra>
// kernel: tpu_custom_call.1
= control target key start
LH: loop header
LB: loop body
LE: loop exit
PB: predicated region body
PF: predicated region fallthrough
CT: control target
= control target key end

     0   :  { %vm82_vm0 = vcmask 1040384   ;;  %vm558_vm1 = vmmov 1   ;;  %vm33_vm3 = vcmask 72704   ;;  %s670_s0 = inlined_call_operand.vmem [shape: f32[9,16], index: 0, kind: input, shape index: {}]   ;;  %s671_s1 = inlined_call_operand.vmem [shape: f32[128,9], index: 1, kind: input, shape index: {}]   ;;  %s672_s2 = inlined_call_operand.vmem [shape: f32[9,128], index: 2, kind: input, shape index: {}]   ;;  %s673_s3 = inlined_call_operand.hbm [shape: f32[9,16], index: 3, kind: output, shape index: {}]  }
   0x1   :  { %v31_v0 = vld [vmem:[%s670_s0] sm:$0xff]  ;;  %v32_v1 = vld [vmem:[%s670_s0 + $0x8] sm:$0x1]  ;;  %vm461_vm2 = vmpackc.low %vm82_vm0, %vm558_vm1 }
   0x2   :  { %v15_v2 = vld [vmem:[%s671_s1] sm:$0xff]  ;;  %v460_v3 = vpack.c.bf16 %v32_v1, %v31_v0  ;;  %v16_v4 = vld [vmem:[%s671_s1 + $0x8] sm:$0xff]  ;;  %v17_v5 = vld [vmem:[%s671_s1 + $0x10] sm:$0xff] }
   0x3   :  { %401 = vmatprep.mubr.msk.f32.mxu0 %vm33_vm3, %v15_v2 }
   0x4   :  { %462 = vmatprep.subr.msk.bf16.mxu0 %vm461_vm2, %v460_v3 }
   0x5   :  { %465 = vmatpush3.bf16.msk.msra.mxu0 %vm461_vm2, %v460_v3 }
   0x6   :  { %8 = vsyncpa [#allocation3], 0  ;;  %v18_v6 = vld [vmem:[%s671_s1 + $0x18] sm:$0xff]  ;;  %v19_v7 = vld [vmem:[%s671_s1 + $0x20] sm:$0xff]  ;;  %s559_s22 = smov [#allocation2]   ;;  %vm326_vm4 = vcmask 122880  }
   0x7   :  { %v20_v8 = vld [vmem:[%s671_s1 + $0x28] sm:$0xff]  ;;  %v21_v9 = vld [vmem:[%s671_s1 + $0x30] sm:$0xff]  ;;  %v22_v10 = vld [vmem:[%s671_s1 + $0x38] sm:$0xff]  ;;  %s333_s23 = sshll.u32 %s559_s22, 4  ;;  %vm324_vm5 = vcmask 130048   ;;  %s334_s23 = int_to_ptr.vmem [resolvable:$true] %s333_s23 }
   0x8   :  { %402 = vmatmul.mubr.msk.f32.vlgmr.msra.gmra.mrb[0].mxu0 %vm33_vm3, %v16_v4  ;;  %v23_v11 = vld [vmem:[%s671_s1 + $0x40] sm:$0xff]  ;;  %v24_v12 = vld [vmem:[%s671_s1 + $0x48] sm:$0xff]  ;;  %v25_v13 = vld [vmem:[%s671_s1 + $0x50] sm:$0xff]  ;;  %s534_s24 = scalar_lea.vmem %s334_s23, 256  ;;  %p539_p1 = scmp.lt.s32.totalorder %s334_s23, %s334_s23 }
   0x9   :  { %404 = vmatprep.mubr.msk.f32.mxu0 %vm33_vm3, %v17_v5  ;;  %v26_v14 = vld [vmem:[%s671_s1 + $0x58] sm:$0xff]  ;;  %v27_v15 = vld [vmem:[%s671_s1 + $0x60] sm:$0xff]  ;;  %v28_v16 = vld [vmem:[%s671_s1 + $0x68] sm:$0xff]  ;;  %p535_p0 = scmp.ne.s32.totalorder %s334_s23, %s534_s24  ;;  %p540_p2 = scmp.lt.s32.totalorder %s534_s24, %s534_s24 }
   0xa   :  { %v29_v17 = vld [vmem:[%s671_s1 + $0x70] sm:$0xff]  ;;  %v30_v18 = vld [vmem:[%s671_s1 + $0x78] sm:$0xff]  ;;  %v247_v19 = vld [vmem:[%s672_s2] sm:$0xff] }
   0xb   :  { %457 = vmatprep.mubr.f32.mxu1 %v247_v19  ;;  %v248_v60 = vld [vmem:[%s672_s2 + $0x8] sm:$0x1]  ;;  %p541_p3 = por %p540_p2, %p539_p1 }
   0xc   :  { %405 = vmatmul.mubr.msk.f32.gmra.mrb[2].mxu0 %vm33_vm3, %v18_v6 }
   0xd   :  { %407 = vmatprep.mubr.msk.f32.mxu0 %vm33_vm3, %v19_v7  ;;  %p542_p4 = pnand %p541_p3, %p535_p0 }
  0x10   :  { %408 = vmatmul.mubr.msk.f32.gmra.mrb[4].mxu0 %vm33_vm3, %v20_v8 }
  0x11   :  { %410 = vmatprep.mubr.msk.f32.mxu0 %vm33_vm3, %v21_v9 }
  0x14   :  { %411 = vmatmul.mubr.msk.f32.gmra.mrb[6].mxu0 %vm33_vm3, %v22_v10 }
  0x15   :  { %413 = vmatprep.mubr.msk.f32.mxu0 %vm33_vm3, %v23_v11 }
  0x18   :  { %414 = vmatmul.mubr.msk.f32.gmra.mrb[8].mxu0 %vm33_vm3, %v24_v12 }
  0x19   :  { %416 = vmatprep.mubr.msk.f32.mxu0 %vm33_vm3, %v25_v13 }
  0x1c   :  { %417 = vmatmul.mubr.msk.f32.gmra.mrb[10].mxu0 %vm33_vm3, %v26_v14 }
  0x1d   :  { %419 = vmatprep.mubr.msk.f32.mxu0 %vm33_vm3, %v27_v15 }
  0x20   :  { %420 = vmatmul.mubr.msk.f32.gmra.mrb[12].mxu0 %vm33_vm3, %v28_v16 }
  0x21   :  { %422 = vmatprep.mubr.msk.f32.mxu0 %vm33_vm3, %v29_v17 }
  0x24   :  { %423 = vmatmul.mubr.msk.f32.gmra.mrb[14].mxu0 %vm33_vm3, %v30_v18 }
  0xdb   :  { %v403_v20 = vpop.f32.mrb[0].mxu0 }
  0xdc   :  { %502 = vtanh.f32 %v403_v20  ;;  %v152_v21 = vpop.f32.mrb[1].mxu0 }
  0xdd   :  { %504 = vtanh.f32 %v152_v21 }
  0xdf   :  { %v406_v22 = vpop.f32.mrb[2].mxu0 }
  0xe0   :  { %506 = vtanh.f32 %v406_v22  ;;  %v162_v23 = vpop.f32.mrb[3].mxu0 }
  0xe1   :  { %508 = vtanh.f32 %v162_v23 }
  0xe3   :  { %v409_v24 = vpop.f32.mrb[4].mxu0 }
  0xe4   :  { %510 = vtanh.f32 %v409_v24  ;;  %v172_v25 = vpop.f32.mrb[5].mxu0 }
  0xe5   :  { %512 = vtanh.f32 %v172_v25 }
  0xe6   :  { %v503_v26 = vpop.eup %502 }
  0xe7   :  { %v505_v27 = vpop.eup %504  ;;  %v412_v28 = vpop.f32.mrb[6].mxu0 }
  0xe8   :  { %514 = vtanh.f32 %v412_v28  ;;  %v182_v29 = vpop.f32.mrb[7].mxu0  ;;  %v466_v30 = vpack.c.bf16 %v503_v26, %v505_v27 }
  0xe9   :  { %516 = vtanh.f32 %v182_v29 }
  0xea   :  { %v507_v31 = vpop.eup %506  ;;  %467 = vmatprep.subr.bf16.mxu1 %v466_v30 }
  0xeb   :  { %v509_v32 = vpop.eup %508  ;;  %v415_v33 = vpop.f32.mrb[8].mxu0  ;;  %469 = vmatpush3.bf16.msra.mxu1 %v466_v30 }
  0xec   :  { %518 = vtanh.f32 %v415_v33  ;;  %v192_v34 = vpop.f32.mrb[9].mxu0  ;;  %v470_v35 = vpack.c.bf16 %v507_v31, %v509_v32 }
  0xed   :  { %520 = vtanh.f32 %v192_v34 }
  0xee   :  { %v511_v36 = vpop.eup %510  ;;  %471 = vmatprep.subr.bf16.mxu1 %v470_v35 }
  0xef   :  { %v513_v37 = vpop.eup %512  ;;  %v418_v38 = vpop.f32.mrb[10].mxu0  ;;  %473 = vmatpush3.bf16.msra.mxu1 %v470_v35 }
  0xf0   :  { %522 = vtanh.f32 %v418_v38  ;;  %v202_v39 = vpop.f32.mrb[11].mxu0  ;;  %v474_v40 = vpack.c.bf16 %v511_v36, %v513_v37 }
  0xf1   :  { %524 = vtanh.f32 %v202_v39 }
  0xf2   :  { %v515_v41 = vpop.eup %514  ;;  %475 = vmatprep.subr.bf16.mxu1 %v474_v40 }
  0xf3   :  { %v517_v42 = vpop.eup %516  ;;  %v421_v43 = vpop.f32.mrb[12].mxu0  ;;  %477 = vmatpush3.bf16.msra.mxu1 %v474_v40 }
  0xf4   :  { %526 = vtanh.f32 %v421_v43  ;;  %v212_v44 = vpop.f32.mrb[13].mxu0  ;;  %v478_v45 = vpack.c.bf16 %v515_v41, %v517_v42 }
  0xf5   :  { %528 = vtanh.f32 %v212_v44 }
  0xf6   :  { %v519_v46 = vpop.eup %518  ;;  %479 = vmatprep.subr.bf16.mxu1 %v478_v45 }
  0xf7   :  { %v521_v47 = vpop.eup %520  ;;  %v424_v48 = vpop.f32.mrb[14].mxu0  ;;  %481 = vmatpush3.bf16.msra.mxu1 %v478_v45 }
  0xf8   :  { %530 = vtanh.f32 %v424_v48  ;;  %v222_v49 = vpop.f32.mrb[15].mxu0  ;;  %v482_v50 = vpack.c.bf16 %v519_v46, %v521_v47 }
  0xf9   :  { %532 = vtanh.f32 %v222_v49 }
  0xfa   :  { %v523_v51 = vpop.eup %522  ;;  %483 = vmatprep.subr.bf16.mxu1 %v482_v50 }
  0xfb   :  { %v525_v52 = vpop.eup %524  ;;  %485 = vmatpush3.bf16.msra.mxu1 %v482_v50 }
  0xfc   :  { %v486_v53 = vpack.c.bf16 %v523_v51, %v525_v52 }
  0xfe   :  { %v527_v54 = vpop.eup %526  ;;  %487 = vmatprep.subr.bf16.mxu1 %v486_v53 }
  0xff   :  { %v529_v55 = vpop.eup %528  ;;  %489 = vmatpush3.bf16.msra.mxu1 %v486_v53 }
 0x100   :  { %v490_v56 = vpack.c.bf16 %v527_v54, %v529_v55 }
 0x102   :  { %v531_v57 = vpop.eup %530  ;;  %491 = vmatprep.subr.bf16.mxu1 %v490_v56 }
 0x103   :  { %v533_v58 = vpop.eup %532  ;;  %493 = vmatpush3.bf16.msra.mxu1 %v490_v56 }
 0x104   :  { %v494_v59 = vpack.c.bf16 %v531_v57, %v533_v58 }
 0x106   :  { %495 = vmatprep.subr.bf16.mxu1 %v494_v59 }
 0x107   :  { %497 = vmatpush3.bf16.msra.mxu1 %v494_v59 }
 0x10a   :  { %458 = vmatmul.mubr.f32.vlgmr.msra.gmra.mrb[0].mxu1 %v248_v60 }
 0x1dd   :  { %v459_v61 = vpop.f32.mrb[0].mxu1 }
 0x1de   :  { %327 = vst.msk [vmem:[#allocation2 + $0x8] sm:$0x1] %vm326_vm4, %v459_v61  ;;  %v315_v62 = vpop.f32.mrb[1].mxu1 }
 0x1df   :  { %325 = vst.msk [vmem:[#allocation2] sm:$0xff] %vm324_vm5, %v315_v62 }
 0x1e0   :  { %545 = shalt.err (!%p542_p4)
}
 0x1e1   :  { %s546_s2 = scalar_lea.hbm %s673_s3, 256 }
 0x1e2   :  { %p547_p5 = scmp.ne.s32.totalorder %s673_s3, %s546_s2  ;;  %p550_p6 = scmp.lt.u32.totalorder %s546_s2, %s673_s3 }
 0x1e4   :  { %p552_p7 = pnand %p550_p6, %p547_p5 }
 0x1e6   :  { %555 = shalt.err (!%p552_p7)
}
 0x1e7   :  { %s560_s4 = smov 128   ;;  %s561_s5 = smov 8  }
 0x1e8   :  { %339 = dma.vmem_to_hbm [thread:$0]  %s334_s23, 256, %s673_s3, [#allocation3], %s560_s4, %s560_s4, %s561_s5  }
 0x1e9   :  { %556 = dma.done.wait [#allocation3], 256  }
 0x1ea   :  { %557 = vsyncadd [#allocation3], 4294967040 }
 0x1eb   :  { %343 = vsyncpa [#allocation3], 1 }

</bundles_post_ra>
